<compile_context>
chip_gen: v6e
topology: v6e:2x2x1
jax: 0.10.0
libtpu: 0.0.40
codegen_flags: <defaults>
</compile_context>

<pallas_src>
import math

import jax
import jax.numpy as jnp
from jax import lax
from jax.experimental import pallas as pl
from jax.experimental.pallas import tpu as pltpu

REGIME_DIM = 8
HIDDEN_DIM = 32

PAIR = 2 * REGIME_DIM          # 16
HID = HIDDEN_DIM               # 32
HID2 = HIDDEN_DIM // 2         # 16
NSCORE = 4
NFEAT = 16
W3S_ROWS = NSCORE + 4 + HID    # 40 (w3^T ; 4 zero-pad rows ; w3f^T)

B_BLK_MAX = 4096               # batch tile; multiple of 256; VMEM-safe on
                               # v5e/v6e/v7x even with default scoped limits


def _round8(x):
    return (x + 7) // 8 * 8


def _round_up(x, m):
    return (x + m - 1) // m * m


# ---- packed parameter slab layout (row offsets, all 8-aligned) -------------
_R_WPAIR = 0                          # [64, 16] = [w1^T ; wf1a^T]; bias col 16
_R_W2 = _R_WPAIR + 2 * HID            # 64:  [16, 32] = w2^T
_R_W3S = _R_W2 + HID2                 # 80:  [40, 16] = [w3^T ; 0 ; (w3@wf1b)^T]; b3 col 16
_R_WF2 = _R_W3S + W3S_ROWS            # 120: [32, 16] = wf2 (in-major)
_R_B2 = _R_WF2 + HID                  # 152: b2 as a column [16, 1] (col 0)
_R_BF2 = _R_B2 + HID2                 # 168: bf2 as a row [1, 16]
_R_TOTAL = _round8(_R_BF2 + 1)        # 176
_SLAB_COLS = HID                      # 32


def _make_kernel(b_blk, batch):
    """Kernel closure; b_blk and the true batch size are trace-time constants."""

    def kernel(pair_ref, p_ref, feat_ref, m_ref):
        pair = pair_ref[...]                                              # [b_blk, 16] batch-major

        # static slices into the resident parameter slab (zero cost)
        w_pair = p_ref[_R_WPAIR:_R_WPAIR + 2 * HID, 0:PAIR]               # [64, 16]
        b_pair = p_ref[_R_WPAIR:_R_WPAIR + 2 * HID, PAIR:PAIR + 1]        # [64, 1]
        w2t = p_ref[_R_W2:_R_W2 + HID2, 0:HID]                            # [16, 32]
        b2 = p_ref[_R_B2:_R_B2 + HID2, 0:1]                               # [16, 1]
        w3s = p_ref[_R_W3S:_R_W3S + W3S_ROWS, 0:HID2]                     # [40, 16]
        b3 = p_ref[_R_W3S:_R_W3S + NSCORE, HID2:HID2 + 1]                 # [4, 1]
        wf2 = p_ref[_R_WF2:_R_WF2 + HID, 0:NFEAT]                         # [32, 16]
        bf2 = p_ref[_R_BF2:_R_BF2 + 1, 0:NFEAT]                           # [1, 16]

        # fused "pair" matmul (contract on the feature axis of the batch-major
        # tile -> rhs-transposed matmul, intermediates stay feature-major /
        # lane-dense).  rows 0:32 feed transition_net layer 1, rows 32:64 feed
        # the feature_extractor first layer (biases already folded in).
        hp = lax.dot_general(w_pair, pair, (((1,), (1,)), ((), ())),
                             preferred_element_type=jnp.float32) + b_pair  # [64, b_blk]
        h1 = jnp.maximum(hp[0:HID, :], 0.0)                                # [32, b_blk]
        c_base = hp[HID:2 * HID, :]                                        # [32, b_blk]

        # transition_net layer 2 (Dropout is identity in eval mode)
        h2 = jnp.maximum(
            jnp.dot(w2t, h1, preferred_element_type=jnp.float32) + b2, 0.0)  # [16, b_blk]

        # single stacked matmul: rows 0:4 -> transition scores,
        # rows 8:40 -> folded scores-contribution to the feature path.
        sc = jnp.dot(w3s, h2, preferred_element_type=jnp.float32)          # [40, b_blk]
        scores = sc[0:NSCORE, :] + b3                                       # [4, b_blk]
        c = c_base + sc[NSCORE + 4:NSCORE + 4 + HID, :]                     # [32, b_blk]
        f1 = jnp.maximum(c, 0.0)

        # batch-major features directly from the MXU: f1^T @ wf2 -> [b_blk, 16]
        feat = lax.dot_general(f1, wf2, (((0,), (0,)), ((), ())),
                               preferred_element_type=jnp.float32) + bf2
        feat_ref[...] = feat

        # fused metric partial sums (EUP sigmoid/tanh, XLU lane reduce).
        # Padded lanes (batch padding) must not contribute -> mask them.
        sig = jax.nn.sigmoid(scores)
        th = jnp.tanh(scores)
        row = lax.broadcasted_iota(jnp.int32, (NSCORE, b_blk), 0)
        act = jnp.where(row == 2, th, sig)                                  # tanh only for row 2
        col = lax.broadcasted_iota(jnp.int32, (NSCORE, b_blk), 1) + pl.program_id(0) * b_blk
        act = jnp.where(col < batch, act, 0.0)
        part = jnp.sum(act, axis=1, keepdims=True)                          # [4, 1]
        m_ref[0:NSCORE, :] = jnp.broadcast_to(part, (NSCORE, 128))
        m_ref[NSCORE:8, :] = jnp.zeros((8 - NSCORE, 128), jnp.float32)

    return kernel


def init_params(key, regime_dim=REGIME_DIM, hidden_dim=HIDDEN_DIM):
    """PyTorch nn.Linear-style init; weights stored [in, out], biases [out]."""
    def linear(key, fan_in, fan_out):
        kw, kb = jax.random.split(key)
        bound = 1.0 / math.sqrt(fan_in)
        w = jax.random.uniform(kw, (fan_in, fan_out), jnp.float32, -bound, bound)
        b = jax.random.uniform(kb, (fan_out,), jnp.float32, -bound, bound)
        return w, b

    keys = jax.random.split(key, 5)
    w1, b1 = linear(keys[0], regime_dim * 2, hidden_dim)        # 16 -> 32
    w2, b2 = linear(keys[1], hidden_dim, hidden_dim // 2)       # 32 -> 16
    w3, b3 = linear(keys[2], hidden_dim // 2, 4)                # 16 -> 4
    wf1, bf1 = linear(keys[3], regime_dim * 2 + 4, hidden_dim)  # 20 -> 32
    wf2, bf2 = linear(keys[4], hidden_dim, 16)                  # 32 -> 16
    return dict(w1=w1, b1=b1, w2=w2, b2=b2, w3=w3, b3=b3,
                wf1=wf1, bf1=bf1, wf2=wf2, bf2=bf2)


def pack_params(params):
    """Fold + pack all parameters into one [176, 32] f32 slab."""
    w1, b1 = params['w1'], params['b1']
    w2, b2 = params['w2'], params['b2']
    w3, b3 = params['w3'], params['b3']
    wf1, bf1 = params['wf1'], params['bf1']
    wf2, bf2 = params['wf2'], params['bf2']

    wf1a = wf1[:PAIR, :]                     # [16, 32]  (pair part of concat)
    wf1b = wf1[PAIR:, :]                     # [4, 32]   (scores part of concat)
    w3f = w3 @ wf1b                          # [16, 32]  fold scores @ wf1b
    bf1_fold = b3 @ wf1b + bf1               # [32]

    w_pair_t = jnp.concatenate([w1.T, wf1a.T], axis=0)           # [64, 16]
    b_pair = jnp.concatenate([b1, bf1_fold], axis=0)             # [64]
    w3_stack = jnp.concatenate(
        [w3.T, jnp.zeros((4, HID2), jnp.float32), w3f.T], axis=0)  # [40, 16]

    slab = jnp.zeros((_R_TOTAL, _SLAB_COLS), jnp.float32)
    slab = slab.at[_R_WPAIR:_R_WPAIR + 2 * HID, 0:PAIR].set(w_pair_t)
    slab = slab.at[_R_WPAIR:_R_WPAIR + 2 * HID, PAIR].set(b_pair)
    slab = slab.at[_R_W2:_R_W2 + HID2, 0:HID].set(w2.T)
    slab = slab.at[_R_W3S:_R_W3S + W3S_ROWS, 0:HID2].set(w3_stack)
    slab = slab.at[_R_W3S:_R_W3S + NSCORE, HID2].set(b3)
    slab = slab.at[_R_WF2:_R_WF2 + HID, 0:NFEAT].set(wf2)
    slab = slab.at[_R_B2:_R_B2 + HID2, 0].set(b2)
    slab = slab.at[_R_BF2, 0:NFEAT].set(bf2)
    return slab


@jax.jit
def _forward_impl(current_regime, regime_history, param_slab):
    if regime_history.shape[1] > 0:          # static shape check (trace-time)
        prev_regime = regime_history[:, -1, :]
    else:
        prev_regime = current_regime
    # batch-major pair, single concatenate, NO transpose in the wrapper
    pair = jnp.concatenate([prev_regime, current_regime], axis=-1)   # [B, 16]
    batch = pair.shape[0]

    # batch tile: multiple of 256, >= 2 grid steps for large batches (v7x megacore)
    b_blk = min(B_BLK_MAX, _round_up(pl.cdiv(batch, 2), 256))
    nb = pl.cdiv(batch, b_blk)
    padded = nb * b_blk
    if padded != batch:
        pair = jnp.pad(pair, ((0, padded - batch), (0, 0)))

    kernel = _make_kernel(b_blk, batch)
    feat_pad, m_part = pl.pallas_call(
        kernel,
        out_shape=(jax.ShapeDtypeStruct((padded, NFEAT), jnp.float32),
                   jax.ShapeDtypeStruct((nb * 8, 128), jnp.float32)),
        grid=(nb,),
        in_specs=[
            pl.BlockSpec((b_blk, PAIR), lambda i: (i, 0)),            # batch tiles
            pl.BlockSpec((_R_TOTAL, _SLAB_COLS), lambda i: (0, 0)),   # resident params
        ],
        out_specs=(
            pl.BlockSpec((b_blk, NFEAT), lambda i: (i, 0)),           # features
            pl.BlockSpec((8, 128), lambda i: (i, 0)),                 # metric partials
        ),
        compiler_params=pltpu.CompilerParams(
            dimension_semantics=("parallel",)),
    )(pair, param_slab)

    feat = feat_pad[:batch]                                           # [B, 16]
    sums = m_part.reshape(nb, 8, 128)[:, 0:NSCORE, 0].sum(axis=0)     # [4]
    metrics = sums / batch                                            # means
    return feat, metrics


def regime_transition_detector(current_regime, regime_history, param_slab):
    """Returns (transition_features [B,16], dict of python-float metrics)."""
    feat, metrics = _forward_impl(current_regime, regime_history, param_slab)
    m = jax.device_get(metrics)   # single host sync for all four metrics
    transition_metrics = {
        'stability': float(m[0]),
        'volatility': float(m[1]),
        'direction': float(m[2]),
        'magnitude': float(m[3]),
    }
    return feat, transition_metrics


def reference_forward(current, history, params):
    """Pure-JAX reference matching the PyTorch module (eval mode)."""
    prev = history[:, -1, :] if history.shape[1] > 0 else current
    pair = jnp.concatenate([prev, current], axis=-1)
    h1 = jax.nn.relu(pair @ params['w1'] + params['b1'])
    h2 = jax.nn.relu(h1 @ params['w2'] + params['b2'])
    scores = h2 @ params['w3'] + params['b3']
    combined = jnp.concatenate([pair, scores], axis=-1)
    f1 = jax.nn.relu(combined @ params['wf1'] + params['bf1'])
    feat = f1 @ params['wf2'] + params['bf2']
    metrics = jnp.stack([
        jax.nn.sigmoid(scores[:, 0]).mean(),
        jax.nn.sigmoid(scores[:, 1]).mean(),
        jnp.tanh(scores[:, 2]).mean(),
        jax.nn.sigmoid(scores[:, 3]).mean(),
    ])
    return feat, metrics


if __name__ == "__main__":
    key = jax.random.PRNGKey(0)
    k_param, k_cur, k_hist = jax.random.split(key, 3)

    batch, seq_len = 2, 8
    params = init_params(k_param)
    param_slab = pack_params(params)
    current_regime = jax.random.normal(k_cur, (batch, REGIME_DIM), jnp.float32)
    regime_history = jax.random.normal(k_hist, (batch, seq_len, REGIME_DIM), jnp.float32)

    feat, metrics = regime_transition_detector(current_regime, regime_history, param_slab)
    feat = jax.block_until_ready(feat)

    assert feat.shape == (batch, 16)
    assert set(metrics.keys()) == {'stability', 'volatility', 'direction', 'magnitude'}

    # correctness vs pure-JAX reference (loose tol: default-precision MXU f32 path)
    ref_feat, ref_metrics = reference_forward(current_regime, regime_history, params)
    assert jnp.allclose(feat, ref_feat, rtol=5e-2, atol=5e-2), "feature mismatch"
    ref_m = jax.device_get(ref_metrics)
    names = ('stability', 'volatility', 'direction', 'magnitude')
    for i, name in enumerate(names):
        assert abs(metrics[name] - float(ref_m[i])) < 5e-2, f"metric {name} mismatch"

    # ragged larger batch: exercises multi-block grid, batch padding and the
    # in-kernel lane masking of the fused metric reduction.
    batch2 = 300
    cur2 = jax.random.normal(jax.random.PRNGKey(7), (batch2, REGIME_DIM), jnp.float32)
    hist2 = jax.random.normal(jax.random.PRNGKey(8), (batch2, seq_len, REGIME_DIM), jnp.float32)
    feat2, metrics2 = regime_transition_detector(cur2, hist2, param_slab)
    feat2 = jax.block_until_ready(feat2)
    ref_feat2, ref_metrics2 = reference_forward(cur2, hist2, params)
    assert feat2.shape == (batch2, 16)
    assert jnp.allclose(feat2, ref_feat2, rtol=5e-2, atol=5e-2), "feature mismatch (B=300)"
    ref_m2 = jax.device_get(ref_metrics2)
    for i, name in enumerate(names):
        assert abs(metrics2[name] - float(ref_m2[i])) < 5e-2, f"metric {name} mismatch (B=300)"

    print("KERNEL_OK")
</pallas_src>

<mosaic_0001>
module attributes {stable_mosaic.version = 11 : i64} {
  func.func @kernel(%arg0: i32, %arg1: memref<256x16xf32, #tpu.memory_space<vmem>>, %arg2: memref<176x32xf32, #tpu.memory_space<vmem>>, %arg3: memref<256x16xf32, #tpu.memory_space<vmem>>, %arg4: memref<8x128xf32, #tpu.memory_space<vmem>>) attributes {dimension_semantics = [#tpu.dimension_semantics<parallel>], iteration_bounds = array<i64: 1>, scalar_prefetch = 0 : i64, scratch_operands = 0 : i64, tpu.core_type = #tpu.core_type<tc>, window_params = [{transform_indices = @transform_0, window_bounds = array<i64: 256, 16>}, {pipeline_mode = #tpu.pipeline_mode<synchronous>, transform_indices = @transform_1, window_bounds = array<i64: 176, 32>}, {transform_indices = @transform_2, window_bounds = array<i64: 256, 16>}, {transform_indices = @transform_3, window_bounds = array<i64: 8, 128>}]} {
    %c0 = arith.constant 0 : index
    %c0_0 = arith.constant 0 : index
    %0 = vector.load %arg1[%c0, %c0_0] : memref<256x16xf32, #tpu.memory_space<vmem>>, vector<256x16xf32>
    %c0_1 = arith.constant 0 : index
    %c0_2 = arith.constant 0 : index
    %1 = vector.load %arg2[%c0_1, %c0_2] : memref<176x32xf32, #tpu.memory_space<vmem>>, vector<64x16xf32>
    %c0_3 = arith.constant 0 : index
    %c16 = arith.constant 16 : index
    %2 = vector.load %arg2[%c0_3, %c16] : memref<176x32xf32, #tpu.memory_space<vmem>>, vector<64x1xf32>
    %c64 = arith.constant 64 : index
    %c0_4 = arith.constant 0 : index
    %3 = vector.load %arg2[%c64, %c0_4] : memref<176x32xf32, #tpu.memory_space<vmem>>, vector<16x32xf32>
    %c152 = arith.constant 152 : index
    %c0_5 = arith.constant 0 : index
    %4 = vector.load %arg2[%c152, %c0_5] : memref<176x32xf32, #tpu.memory_space<vmem>>, vector<16x1xf32>
    %c80 = arith.constant 80 : index
    %c0_6 = arith.constant 0 : index
    %5 = vector.load %arg2[%c80, %c0_6] : memref<176x32xf32, #tpu.memory_space<vmem>>, vector<40x16xf32>
    %c80_7 = arith.constant 80 : index
    %c16_8 = arith.constant 16 : index
    %6 = vector.load %arg2[%c80_7, %c16_8] : memref<176x32xf32, #tpu.memory_space<vmem>>, vector<4x1xf32>
    %c120 = arith.constant 120 : index
    %c0_9 = arith.constant 0 : index
    %7 = vector.load %arg2[%c120, %c0_9] : memref<176x32xf32, #tpu.memory_space<vmem>>, vector<32x16xf32>
    %c168 = arith.constant 168 : index
    %c0_10 = arith.constant 0 : index
    %8 = vector.load %arg2[%c168, %c0_10] : memref<176x32xf32, #tpu.memory_space<vmem>>, vector<1x16xf32>
    %cst = arith.constant dense<0.000000e+00> : vector<64x256xf32>
    %9 = tpu.matmul %1, %0, %cst {dimension_numbers = #tpu.dot_dimension_numbers<[1], [1], [0], [0], [0, 0, 1, 0], [], []>} : vector<64x16xf32>, vector<256x16xf32>, vector<64x256xf32> -> vector<64x256xf32>
    %10 = vector.broadcast %2 : vector<64x1xf32> to vector<64x256xf32>
    %11 = arith.addf %9, %10 : vector<64x256xf32>
    %12 = vector.extract_strided_slice %11 {offsets = [0, 0], sizes = [32, 256], strides = [1, 1]} : vector<64x256xf32> to vector<32x256xf32>
    %cst_11 = arith.constant 0.000000e+00 : f32
    %13 = vector.broadcast %cst_11 : f32 to vector<32x256xf32>
    %14 = arith.maximumf %12, %13 : vector<32x256xf32>
    %15 = vector.extract_strided_slice %11 {offsets = [32, 0], sizes = [32, 256], strides = [1, 1]} : vector<64x256xf32> to vector<32x256xf32>
    %cst_12 = arith.constant dense<0.000000e+00> : vector<16x256xf32>
    %16 = tpu.matmul %3, %14, %cst_12 {dimension_numbers = #tpu.dot_dimension_numbers<[1], [0], [0], [1], [0, 0, 1, 1], [], []>} : vector<16x32xf32>, vector<32x256xf32>, vector<16x256xf32> -> vector<16x256xf32>
    %17 = vector.broadcast %4 : vector<16x1xf32> to vector<16x256xf32>
    %18 = arith.addf %16, %17 : vector<16x256xf32>
    %cst_13 = arith.constant 0.000000e+00 : f32
    %19 = vector.broadcast %cst_13 : f32 to vector<16x256xf32>
    %20 = arith.maximumf %18, %19 : vector<16x256xf32>
    %cst_14 = arith.constant dense<0.000000e+00> : vector<40x256xf32>
    %21 = tpu.matmul %5, %20, %cst_14 {dimension_numbers = #tpu.dot_dimension_numbers<[1], [0], [0], [1], [0, 0, 1, 1], [], []>} : vector<40x16xf32>, vector<16x256xf32>, vector<40x256xf32> -> vector<40x256xf32>
    %22 = vector.extract_strided_slice %21 {offsets = [0, 0], sizes = [4, 256], strides = [1, 1]} : vector<40x256xf32> to vector<4x256xf32>
    %23 = vector.broadcast %6 : vector<4x1xf32> to vector<4x256xf32>
    %24 = arith.addf %22, %23 : vector<4x256xf32>
    %25 = vector.extract_strided_slice %21 {offsets = [8, 0], sizes = [32, 256], strides = [1, 1]} : vector<40x256xf32> to vector<32x256xf32>
    %26 = arith.addf %15, %25 : vector<32x256xf32>
    %cst_15 = arith.constant 0.000000e+00 : f32
    %27 = vector.broadcast %cst_15 : f32 to vector<32x256xf32>
    %28 = arith.maximumf %26, %27 : vector<32x256xf32>
    %cst_16 = arith.constant dense<0.000000e+00> : vector<256x16xf32>
    %29 = tpu.matmul %28, %7, %cst_16 {dimension_numbers = #tpu.dot_dimension_numbers<[0], [0], [1], [1], [0, 1, 1, 1], [], []>} : vector<32x256xf32>, vector<32x16xf32>, vector<256x16xf32> -> vector<256x16xf32>
    %30 = vector.broadcast %8 : vector<1x16xf32> to vector<256x16xf32>
    %31 = arith.addf %29, %30 : vector<256x16xf32>
    %c0_17 = arith.constant 0 : index
    %c0_18 = arith.constant 0 : index
    %32 = vector.load %arg3[%c0_17, %c0_18] : memref<256x16xf32, #tpu.memory_space<vmem>>, vector<256x16xf32>
    tpu.vector_store %arg3[%c0_17, %c0_18], %31 {strides = array<i32>} : memref<256x16xf32, #tpu.memory_space<vmem>>, vector<256x16xf32>,
    %33 = arith.negf %24 : vector<4x256xf32>
    %34 = math.exp %33 : vector<4x256xf32>
    %cst_19 = arith.constant 1.000000e+00 : f32
    %35 = vector.broadcast %cst_19 : f32 to vector<4x256xf32>
    %36 = arith.addf %35, %34 : vector<4x256xf32>
    %37 = arith.divf %35, %36 : vector<4x256xf32>
    %38 = math.tanh %24 : vector<4x256xf32>
    %39 = tpu.iota {dimensions = array<i32: 0>} : vector<4x256xi32>
    %c2_i32 = arith.constant 2 : i32
    %40 = vector.broadcast %c2_i32 : i32 to vector<4x256xi32>
    %41 = arith.cmpi eq, %39, %40 : vector<4x256xi32>
    %42 = arith.select %41, %38, %37 : vector<4x256xi1>, vector<4x256xf32>
    %43 = tpu.iota {dimensions = array<i32: 1>} : vector<4x256xi32>
    %c256_i32 = arith.constant 256 : i32
    %44 = arith.muli %arg0, %c256_i32 : i32
    %45 = vector.broadcast %44 : i32 to vector<4x256xi32>
    %46 = arith.addi %43, %45 : vector<4x256xi32>
    %c2_i32_20 = arith.constant 2 : i32
    %47 = vector.broadcast %c2_i32_20 : i32 to vector<4x256xi32>
    %48 = arith.cmpi slt, %46, %47 : vector<4x256xi32>
    %cst_21 = arith.constant 0.000000e+00 : f32
    %49 = vector.broadcast %cst_21 : f32 to vector<4x256xf32>
    %50 = arith.select %48, %42, %49 : vector<4x256xi1>, vector<4x256xf32>
    %cst_22 = arith.constant dense<0.000000e+00> : vector<4xf32>
    %51 = vector.multi_reduction <add>, %50, %cst_22 [1] : vector<4x256xf32> to vector<4xf32>
    %52 = vector.shape_cast %51 : vector<4xf32> to vector<4x1xf32>
    %53 = vector.shape_cast %52 : vector<4x1xf32> to vector<4x1xf32>
    %54 = vector.broadcast %53 : vector<4x1xf32> to vector<4x128xf32>
    %c0_23 = arith.constant 0 : index
    %c0_24 = arith.constant 0 : index
    %55 = vector.load %arg4[%c0_23, %c0_24] : memref<8x128xf32, #tpu.memory_space<vmem>>, vector<4x128xf32>
    tpu.vector_store %arg4[%c0_23, %c0_24], %54 {strides = array<i32>} : memref<8x128xf32, #tpu.memory_space<vmem>>, vector<4x128xf32>,
    %cst_25 = arith.constant 0.000000e+00 : f32
    %56 = vector.broadcast %cst_25 : f32 to vector<4x128xf32>
    %c4 = arith.constant 4 : index
    %c0_26 = arith.constant 0 : index
    %57 = vector.load %arg4[%c4, %c0_26] : memref<8x128xf32, #tpu.memory_space<vmem>>, vector<4x128xf32>
    tpu.vector_store %arg4[%c4, %c0_26], %56 {strides = array<i32>} : memref<8x128xf32, #tpu.memory_space<vmem>>, vector<4x128xf32>,
    return
  }
  func.func @transform_0(%arg0: i32) -> (i32, i32) {
    %c0_i32 = arith.constant 0 : i32
    %c0_i32_0 = arith.constant 0 : i32
    return %arg0, %c0_i32 : i32, i32
  }
  func.func @transform_1(%arg0: i32) -> (i32, i32) {
    %c0_i32 = arith.constant 0 : i32
    %c0_i32_0 = arith.constant 0 : i32
    %c0_i32_1 = arith.constant 0 : i32
    return %c0_i32, %c0_i32_0 : i32, i32
  }
  func.func @transform_2(%arg0: i32) -> (i32, i32) {
    %c0_i32 = arith.constant 0 : i32
    %c0_i32_0 = arith.constant 0 : i32
    return %arg0, %c0_i32 : i32, i32
  }
  func.func @transform_3(%arg0: i32) -> (i32, i32) {
    %c0_i32 = arith.constant 0 : i32
    %c0_i32_0 = arith.constant 0 : i32
    return %arg0, %c0_i32 : i32, i32
  }
}

</mosaic_0001>

<bundles_post_ra>
// kernel: _forward_impl.1
= control target key start
LH: loop header
LB: loop body
LE: loop exit
PB: predicated region body
PF: predicated region fallthrough
CT: control target
= control target key end

     0   :  { %vm108_vm0 = vcmask 130048   ;;  %v1277_v3 = vmov 16   ;;  %v1278_v37 = vmov 0.0   ;;  %v1279_v40 = vmov 0   ;;  %s1735_s0 = inlined_call_operand.vmem [shape: f32[256,16], index: 0, kind: input, shape index: {}]   ;;  %s1736_s1 = inlined_call_operand.vmem [shape: f32[176,32], index: 1, kind: input, shape index: {}]   ;;  %s1737_s3 = inlined_call_operand.vmem [shape: f32[8,128], index: 3, kind: output, shape index: {1}]   ;;  %s1738_s2 = inlined_call_operand.vmem [shape: f32[256,16], index: 2, kind: output, shape index: {0}]  }
   0x1   :  { %v44_v0 = vld [vmem:[%s1735_s0 + $0xf8] sm:$0xff]  ;;  %v43_v2 = vld [vmem:[%s1735_s0 + $0xf0] sm:$0xff]  ;;  %1266 = vset.pattern.permute.xlu1 %v1277_v3  ;;  %1265 = vset.pattern.permute.xlu0 %v1277_v3  ;;  %v42_v5 = vld [vmem:[%s1735_s0 + $0xe8] sm:$0xff]  ;;  %vm352_vm1 = vcmask 261120   ;;  %vm1024_vm4 = vcmask 1043456  }
   0x2   :  { %v28_v1 = vld [vmem:[%s1735_s0 + $0x78] sm:$0xff]  ;;  %1122 = vmatprep.subr.msk.mxu0 %vm108_vm0, %v44_v0  ;;  %v27_v4 = vld [vmem:[%s1735_s0 + $0x70] sm:$0xff]  ;;  %v26_v6 = vld [vmem:[%s1735_s0 + $0x68] sm:$0xff]  ;;  %423 = vmatprep.mubr.f32.mxu1 %v1278_v37  ;;  %1031 = vst [vmem:[%s1737_s3 + $0x4] sm:$0xf] %v1278_v37 }
   0x3   :  { %1123 = vmatpush3.xpose.msk.msra.mxu0 %vm108_vm0, %v28_v1  ;;  %v41_v7 = vld [vmem:[%s1735_s0 + $0xe0] sm:$0xff]  ;;  %v46_v10 = vld [vmem:[%s1736_s1 + $0x8] sm:$0xff]  ;;  %v48_v11 = vld [vmem:[%s1736_s1 + $0x18] sm:$0xff] }
   0x4   :  { %1124 = vmatprep.subr.msk.mxu0 %vm108_vm0, %v43_v2  ;;  %v45_v8 = vld [vmem:[%s1736_s1] sm:$0xff]  ;;  %v40_v12 = vld [vmem:[%s1735_s0 + $0xd8] sm:$0xff]  ;;  %75 = vperm.xlu1 %1266, %v46_v10   ;;  %v47_v14 = vld [vmem:[%s1736_s1 + $0x10] sm:$0xff] }
   0x5   :  { %v25_v9 = vld [vmem:[%s1735_s0 + $0x60] sm:$0xff]  ;;  %1154 = vmatprep.mubr.msk.f32.mxu0 %vm108_vm0, %v45_v8  ;;  %85 = vperm.xlu0 %1265, %v48_v11   ;;  %v24_v13 = vld [vmem:[%s1735_s0 + $0x58] sm:$0xff]  ;;  %v39_v15 = vld [vmem:[%s1735_s0 + $0xd0] sm:$0xff] }
   0x6   :  { %v23_v16 = vld [vmem:[%s1735_s0 + $0x50] sm:$0xff]  ;;  %v38_v17 = vld [vmem:[%s1735_s0 + $0xc8] sm:$0xff]  ;;  %v37_v19 = vld [vmem:[%s1735_s0 + $0xc0] sm:$0xff] }
   0x7   :  { %1125 = vmatpush3.xpose.msk.msra.mxu0 %vm108_vm0, %v27_v4  ;;  %v22_v18 = vld [vmem:[%s1735_s0 + $0x48] sm:$0xff]  ;;  %v21_v20 = vld [vmem:[%s1735_s0 + $0x40] sm:$0xff]  ;;  %v36_v21 = vld [vmem:[%s1735_s0 + $0xb8] sm:$0xff] }
   0x8   :  { %1126 = vmatprep.subr.msk.mxu0 %vm108_vm0, %v42_v5  ;;  %70 = vperm.xlu1 %1266, %v45_v8   ;;  %v20_v22 = vld [vmem:[%s1735_s0 + $0x38] sm:$0xff]  ;;  %v35_v23 = vld [vmem:[%s1735_s0 + $0xb0] sm:$0xff]  ;;  %v34_v25 = vld [vmem:[%s1735_s0 + $0xa8] sm:$0xff] }
   0x9   :  { %80 = vperm.xlu0 %1265, %v47_v14   ;;  %v19_v24 = vld [vmem:[%s1735_s0 + $0x30] sm:$0xff]  ;;  %v18_v26 = vld [vmem:[%s1735_s0 + $0x28] sm:$0xff]  ;;  %v33_v27 = vld [vmem:[%s1735_s0 + $0xa0] sm:$0xff] }
   0xa   :  { %v17_v28 = vld [vmem:[%s1735_s0 + $0x20] sm:$0xff]  ;;  %v32_v29 = vld [vmem:[%s1735_s0 + $0x98] sm:$0xff]  ;;  %v31_v31 = vld [vmem:[%s1735_s0 + $0x90] sm:$0xff] }
   0xb   :  { %1127 = vmatpush3.xpose.msk.msra.mxu0 %vm108_vm0, %v26_v6  ;;  %v16_v30 = vld [vmem:[%s1735_s0 + $0x18] sm:$0xff]  ;;  %v15_v32 = vld [vmem:[%s1735_s0 + $0x10] sm:$0xff]  ;;  %v30_v33 = vld [vmem:[%s1735_s0 + $0x88] sm:$0xff] }
   0xc   :  { %1128 = vmatprep.subr.msk.mxu0 %vm108_vm0, %v41_v7  ;;  %v14_v34 = vld [vmem:[%s1735_s0 + $0x8] sm:$0xff]  ;;  %v29_v35 = vld [vmem:[%s1735_s0 + $0x80] sm:$0xff]  ;;  %v55_v38 = vld [vmem:[%s1736_s1 + $0x98] sm:$0xff]  ;;  %1268 = vset.pattern.permute.xlu1 %v1279_v40 }
   0xd   :  { %v13_v36 = vld [vmem:[%s1735_s0] sm:$0xff]  ;;  %1267 = vset.pattern.permute.xlu0 %v1279_v40  ;;  %344 = vperm.xlu1 %1268, %v55_v38   ;;  %v54_v6 = vld [vmem:[%s1736_s1 + $0x48] sm:$0xff] }
   0xe   :  { %v56_v39 = vld [vmem:[%s1736_s1 + $0xa0] sm:$0xff] }
   0xf   :  { %1129 = vmatpush3.xpose.msk.msra.mxu0 %vm108_vm0, %v25_v9  ;;  %349 = vperm.xlu0 %1267, %v56_v39   ;;  %v53_v5 = vld [vmem:[%s1736_s1 + $0x40] sm:$0xff]  ;;  %v51_v9 = vld [vmem:[%s1736_s1 + $0x30] sm:$0xff] }
  0x10   :  { %1130 = vmatprep.subr.msk.mxu0 %vm108_vm0, %v40_v12  ;;  %v49_v7 = vld [vmem:[%s1736_s1 + $0x20] sm:$0xff] }
  0x11   :  { %1269 = vset.pattern.permute.xlu1 %v1277_v3 }
  0x12   :  { %90 = vperm.xlu1 %1269, %v49_v7  }
  0x13   :  { %1131 = vmatpush3.xpose.msk.msra.mxu0 %vm108_vm0, %v24_v13  ;;  %1270 = vset.pattern.permute.xlu0 %v1277_v3 }
  0x14   :  { %1132 = vmatprep.subr.msk.mxu0 %vm108_vm0, %v39_v15 }
  0x16   :  { %100 = vperm.xlu1 %1269, %v51_v9  }
  0x17   :  { %1133 = vmatpush3.xpose.msk.msra.mxu0 %vm108_vm0, %v23_v16 }
  0x18   :  { %1134 = vmatprep.subr.msk.mxu0 %vm108_vm0, %v38_v17 }
  0x1b   :  { %1135 = vmatpush3.xpose.msk.msra.mxu0 %vm108_vm0, %v22_v18 }
  0x1c   :  { %1136 = vmatprep.subr.msk.mxu0 %vm108_vm0, %v37_v19 }
  0x1f   :  { %1137 = vmatpush3.xpose.msk.msra.mxu0 %vm108_vm0, %v21_v20 }
  0x20   :  { %1138 = vmatprep.subr.msk.mxu0 %vm108_vm0, %v36_v21 }
  0x23   :  { %1139 = vmatpush3.xpose.msk.msra.mxu0 %vm108_vm0, %v20_v22 }
  0x24   :  { %1140 = vmatprep.subr.msk.mxu0 %vm108_vm0, %v35_v23 }
  0x27   :  { %1141 = vmatpush3.xpose.msk.msra.mxu0 %vm108_vm0, %v19_v24 }
  0x28   :  { %1142 = vmatprep.subr.msk.mxu0 %vm108_vm0, %v34_v25  ;;  %v57_v25 = vld [vmem:[%s1736_s1 + $0x50] sm:$0xff] }
  0x2b   :  { %1143 = vmatpush3.xpose.msk.msra.mxu0 %vm108_vm0, %v18_v26  ;;  %v58_v26 = vld [vmem:[%s1736_s1 + $0x58] sm:$0xff] }
  0x2c   :  { %1144 = vmatprep.subr.msk.mxu0 %vm108_vm0, %v33_v27  ;;  %v59_v27 = vld [vmem:[%s1736_s1 + $0x60] sm:$0xff] }
  0x2f   :  { %1145 = vmatpush3.xpose.msk.msra.mxu0 %vm108_vm0, %v17_v28  ;;  %v60_v28 = vld [vmem:[%s1736_s1 + $0x68] sm:$0xff] }
  0x30   :  { %1146 = vmatprep.subr.msk.mxu0 %vm108_vm0, %v32_v29  ;;  %v61_v29 = vld [vmem:[%s1736_s1 + $0x70] sm:$0xff] }
  0x33   :  { %1147 = vmatpush3.xpose.msk.msra.mxu0 %vm108_vm0, %v16_v30  ;;  %v66_v30 = vld [vmem:[%s1736_s1 + $0x90] sm:$0xff] }
  0x34   :  { %1148 = vmatprep.subr.msk.mxu0 %vm108_vm0, %v31_v31 }
  0x37   :  { %1149 = vmatpush3.xpose.msk.msra.mxu0 %vm108_vm0, %v15_v32 }
  0x38   :  { %1150 = vmatprep.subr.msk.mxu0 %vm108_vm0, %v30_v33 }
  0x3b   :  { %1151 = vmatpush3.xpose.msk.msra.mxu0 %vm108_vm0, %v14_v34 }
  0x3c   :  { %1152 = vmatprep.subr.msk.mxu0 %vm108_vm0, %v29_v35 }
  0x3f   :  { %1153 = vmatpush3.xpose.msk.msra.mxu0 %vm108_vm0, %v13_v36 }
  0x42   :  { %1155 = vmatmul.mubr.msk.f32.vlgmr.msra.gmra.mxu0 %vm108_vm0, %v45_v8  ;;  %v50_v8 = vld [vmem:[%s1736_s1 + $0x28] sm:$0xff] }
  0x43   :  { %1156 = vmatprep.mubr.msk.f32.mxu0 %vm108_vm0, %v46_v10  ;;  %95 = vperm.xlu0 %1270, %v50_v8  }
  0x46   :  { %1157 = vmatmul.mubr.msk.f32.gmra.mxu0 %vm108_vm0, %v46_v10  ;;  %v52_v10 = vld [vmem:[%s1736_s1 + $0x38] sm:$0xff] }
  0x47   :  { %1158 = vmatprep.mubr.msk.f32.mxu0 %vm108_vm0, %v47_v14  ;;  %105 = vperm.xlu1 %1269, %v52_v10  }
  0x4a   :  { %1159 = vmatmul.mubr.msk.f32.gmra.mxu0 %vm108_vm0, %v47_v14 }
  0x4b   :  { %1160 = vmatprep.mubr.msk.f32.mxu0 %vm108_vm0, %v48_v11 }
  0x4e   :  { %1161 = vmatmul.mubr.msk.f32.gmra.mxu0 %vm108_vm0, %v48_v11 }
  0x4f   :  { %1162 = vmatprep.mubr.msk.f32.mxu0 %vm108_vm0, %v49_v7 }
  0x52   :  { %1163 = vmatmul.mubr.msk.f32.gmra.mxu0 %vm108_vm0, %v49_v7 }
  0x53   :  { %1164 = vmatprep.mubr.msk.f32.mxu0 %vm108_vm0, %v50_v8 }
  0x56   :  { %1165 = vmatmul.mubr.msk.f32.gmra.mxu0 %vm108_vm0, %v50_v8 }
  0x57   :  { %1166 = vmatprep.mubr.msk.f32.mxu0 %vm108_vm0, %v51_v9 }
  0x5a   :  { %1167 = vmatmul.mubr.msk.f32.gmra.mxu0 %vm108_vm0, %v51_v9 }
  0x5b   :  { %1168 = vmatprep.mubr.msk.f32.mxu0 %vm108_vm0, %v52_v10 }
  0x5e   :  { %1169 = vmatmul.mubr.msk.f32.gmra.mxu0 %vm108_vm0, %v52_v10 }
  0x7f   :  { %v76_v48 = vpop.permute.xlu1 %75 }
  0x80   :  { %v86_v45 = vpop.permute.xlu0 %85 }
  0x83   :  { %v71_v56 = vpop.permute.xlu1 %70 }
  0x84   :  { %v81_v50 = vpop.permute.xlu0 %80 }
  0x88   :  { %v345_v15 = vpop.permute.xlu1 %344 }
  0x8a   :  { %v350_v13 = vpop.permute.xlu0 %349 }
  0x8d   :  { %v91_v35 = vpop.permute.xlu1 %90 }
 0x102   :  { %v287_v41 = vpop.f32.mrf.mxu0 }
 0x103   :  { %v288_v63 = vadd.f32 %v287_v41, %v71_v56  ;;  %v96_v41 = vpop.permute.xlu0 %95 }
 0x104   :  { %v289_v42 = vpop.f32.mrf.mxu0 }
 0x105   :  { %v290_v61 = vadd.f32 %v289_v42, %v71_v56  ;;  %v334_v4 = vmax.f32 %v288_v63, 0.0  ;;  %v65_v42 = vld [vmem:[%s1736_s1 + $0x88] sm:$0xff] }
 0x106   :  { %v293_v43 = vpop.f32.mrf.mxu0 }
 0x107   :  { %v294_v59 = vadd.f32 %v293_v43, %v76_v48  ;;  %v335_v3 = vmax.f32 %v290_v61, 0.0 }
 0x108   :  { %v295_v44 = vpop.f32.mrf.mxu0 }
 0x109   :  { %v296_v57 = vadd.f32 %v295_v44, %v76_v48  ;;  %v336_v2 = vmax.f32 %v294_v59, 0.0  ;;  %v64_v48 = vld [vmem:[%s1736_s1 + $0x80] sm:$0xff] }
 0x10a   :  { %v299_v46 = vpop.f32.mrf.mxu0 }
 0x10b   :  { %v300_v55 = vadd.f32 %v299_v46, %v81_v50  ;;  %v337_v1 = vmax.f32 %v296_v57, 0.0 }
 0x10c   :  { %v301_v47 = vpop.f32.mrf.mxu0 }
 0x10d   :  { %v302_v53 = vadd.f32 %v301_v47, %v81_v50  ;;  %v338_v0 = vmax.f32 %v300_v55, 0.0 }
 0x10e   :  { %v305_v49 = vpop.f32.mrf.mxu0 }
 0x10f   :  { %v306_v51 = vadd.f32 %v305_v49, %v86_v45  ;;  %v339_v62 = vmax.f32 %v302_v53, 0.0  ;;  %v63_v53 = vld [vmem:[%s1736_s1 + $0x78] sm:$0xff] }
 0x110   :  { %v307_v52 = vpop.f32.mrf.mxu0 }
 0x111   :  { %v308_v54 = vadd.f32 %v307_v52, %v86_v45  ;;  %v340_v60 = vmax.f32 %v306_v51, 0.0  ;;  %v101_v45 = vpop.permute.xlu1 %100 }
 0x112   :  { %v311_v31 = vpop.f32.mrf.mxu0 }
 0x113   :  { %v341_v58 = vmax.f32 %v308_v54, 0.0  ;;  %v312_v38 = vadd.f32 %v311_v31, %v91_v35 }
 0x114   :  { %v313_v32 = vpop.f32.mrf.mxu0 }
 0x115   :  { %383 = vmatprep.subr.mxu1 %v341_v58  ;;  %v314_v44 = vadd.f32 %v313_v32, %v91_v35  ;;  %v106_v63 = vpop.permute.xlu1 %105 }
 0x116   :  { %384 = vmatpush1.msra.mxu1 %v340_v60  ;;  %v317_v33 = vpop.f32.mrf.mxu0 }
 0x117   :  { %385 = vmatprep.subr.mxu1 %v339_v62  ;;  %v318_v47 = vadd.f32 %v317_v33, %v96_v41 }
 0x118   :  { %386 = vmatpush1.msra.mxu1 %v338_v0  ;;  %v319_v34 = vpop.f32.mrf.mxu0 }
 0x119   :  { %387 = vmatprep.subr.mxu1 %v337_v1  ;;  %v320_v55 = vadd.f32 %v319_v34, %v96_v41 }
 0x11a   :  { %388 = vmatpush1.msra.mxu1 %v336_v2  ;;  %v323_v39 = vpop.f32.mrf.mxu0 }
 0x11b   :  { %389 = vmatprep.subr.mxu1 %v335_v3  ;;  %v324_v60 = vadd.f32 %v323_v39, %v101_v45 }
 0x11c   :  { %390 = vmatpush1.msra.mxu1 %v334_v4  ;;  %v325_v49 = vpop.f32.mrf.mxu0 }
 0x11d   :  { %1080 = vmatmul.mubr.msk.f32.vlgmr.msra.gmra.mxu1 %vm352_vm1, %v53_v5  ;;  %v326_v1 = vadd.f32 %v325_v49, %v101_v45 }
 0x11e   :  { %429 = vmatprep.mubr.f32.mxu1 %v1278_v37  ;;  %v329_v58 = vpop.f32.mrf.mxu0 }
 0x120   :  { %v331_v4 = vpop.f32.mrf.mxu0 }
 0x121   :  { %1081 = vmatmul.mubr.msk.f32.gmra.mxu1 %vm352_vm1, %v54_v6  ;;  %v330_v6 = vadd.f32 %v329_v58, %v106_v63  ;;  %v332_v10 = vadd.f32 %v331_v4, %v106_v63 }
 0x122   :  { %519 = vmatprep.mubr.f32.mxu1 %v1278_v37 }
 0x1dd   :  { %v425_v11 = vpop.f32.mrf.mxu1 }
 0x1de   :  { %v426_v20 = vadd.f32 %v425_v11, %v345_v15 }
 0x1df   :  { %v427_v12 = vpop.f32.mrf.mxu1 }
 0x1e0   :  { %v428_v18 = vadd.f32 %v427_v12, %v345_v15  ;;  %v436_v24 = vmax.f32 %v426_v20, 0.0 }
 0x1e1   :  { %v431_v14 = vpop.f32.mrf.mxu1 }
 0x1e2   :  { %v432_v16 = vadd.f32 %v431_v14, %v350_v13  ;;  %v437_v23 = vmax.f32 %v428_v18, 0.0 }
 0x1e3   :  { %v433_v17 = vpop.f32.mrf.mxu1 }
 0x1e4   :  { %v434_v19 = vadd.f32 %v433_v17, %v350_v13  ;;  %v438_v22 = vmax.f32 %v432_v16, 0.0  ;;  %v62_v17 = vld [vmem:[%s1736_s1 + $0x50] sm:$0xf] }
 0x1e6   :  { %v439_v21 = vmax.f32 %v434_v19, 0.0 }
 0x1e8   :  { %483 = vmatprep.subr.mxu1 %v439_v21 }
 0x1e9   :  { %484 = vmatpush1.msra.mxu1 %v438_v22 }
 0x1ea   :  { %485 = vmatprep.subr.mxu1 %v437_v23 }
 0x1eb   :  { %486 = vmatpush1.msra.mxu1 %v436_v24 }
 0x1ec   :  { %1082 = vmatmul.mubr.msk.f32.vlgmr.msra.gmra.mxu1 %vm108_vm0, %v57_v25  ;;  %1206 = vmatprep.subr.mxu1 %v66_v30 }
 0x1ed   :  { %525 = vmatprep.mubr.f32.mxu1 %v1278_v37  ;;  %1207 = vmatpush3.msra.mxu1 %v66_v30 }
 0x1ee   :  { %1208 = vmatprep.subr.mxu1 %v65_v42 }
 0x1ef   :  { %1209 = vmatpush3.msra.mxu1 %v65_v42 }
 0x1f0   :  { %1083 = vmatmul.mubr.msk.f32.gmra.mxu1 %vm108_vm0, %v58_v26  ;;  %1210 = vmatprep.subr.mxu1 %v64_v48 }
 0x1f1   :  { %531 = vmatprep.mubr.f32.mxu1 %v1278_v37  ;;  %1211 = vmatpush3.msra.mxu1 %v64_v48 }
 0x1f2   :  { %1212 = vmatprep.subr.mxu1 %v63_v53 }
 0x1f3   :  { %1213 = vmatpush3.msra.mxu1 %v63_v53 }
 0x1f4   :  { %1084 = vmatmul.mubr.msk.f32.gmra.mxu1 %vm108_vm0, %v59_v27 }
 0x1f5   :  { %537 = vmatprep.mubr.f32.mxu1 %v1278_v37 }
 0x1f8   :  { %1085 = vmatmul.mubr.msk.f32.gmra.mxu1 %vm108_vm0, %v60_v28 }
 0x1f9   :  { %543 = vmatprep.mubr.f32.mxu1 %v1278_v37 }
 0x1fc   :  { %1086 = vmatmul.mubr.msk.f32.gmra.mxu1 %vm108_vm0, %v61_v29 }
 0x2ac   :  { %v1516_v36 = vpop.f32.mrf.mxu1 }
 0x2ae   :  { %v523_v40 = vpop.f32.mrf.mxu1 }
 0x2b0   :  { %v527_v43 = vpop.f32.mrf.mxu1 }
 0x2b1   :  { %v557_v46 = vadd.f32 %v527_v43, %v312_v38 }
 0x2b2   :  { %v529_v50 = vpop.f32.mrf.mxu1 }
 0x2b3   :  { %v565_v51 = vmax.f32 %v557_v46, 0.0  ;;  %v558_v52 = vadd.f32 %v529_v50, %v314_v44 }
 0x2b4   :  { %v533_v54 = vpop.f32.mrf.mxu1 }
 0x2b5   :  { %v566_v56 = vmax.f32 %v558_v52, 0.0  ;;  %v559_v57 = vadd.f32 %v533_v54, %v318_v47  ;;  %577 = vxpose.xlu0.b32.start [1/4] (short) %v565_v51, 128 }
 0x2b6   :  { %v535_v59 = vpop.f32.mrf.mxu1 }
 0x2b7   :  { %v567_v61 = vmax.f32 %v559_v57, 0.0  ;;  %v560_v62 = vadd.f32 %v535_v59, %v320_v55  ;;  %609 = vxpose.xlu1.b32.start [1/4] (short) %v566_v56, 128  ;;  %v1008_v57 = vlaneseq }
 0x2b8   :  { %v539_v0 = vpop.f32.mrf.mxu1 }
 0x2b9   :  { %v568_v2 = vmax.f32 %v560_v62, 0.0  ;;  %v561_v3 = vadd.f32 %v539_v0, %v324_v60  ;;  %578 = vxpose.xlu0.b32.cont [2/4] (short) %v567_v61, 128  ;;  %v1009_v58 = vshrl.u32 %v1008_v57, 7  ;;  %v1014_v59 = vand.u32 127, %v1008_v57 }
 0x2ba   :  { %v541_v5 = vpop.f32.mrf.mxu1 }
 0x2bb   :  { %v569_v7 = vmax.f32 %v561_v3, 0.0  ;;  %v562_v8 = vadd.f32 %v541_v5, %v326_v1  ;;  %610 = vxpose.xlu1.b32.cont [2/4] (short) %v568_v2, 128  ;;  %vm1010_vm2 = vcmp.eq.s32.totalorder %v1009_v58, 2  ;;  %vm1020_vm3 = vcmp.lt.s32.totalorder %v1014_v59, 2 }
 0x2bc   :  { %v545_v9 = vpop.f32.mrf.mxu1 }
 0x2bd   :  { %v570_v11 = vmax.f32 %v562_v8, 0.0  ;;  %v563_v12 = vadd.f32 %v545_v9, %v330_v6  ;;  %579 = vxpose.xlu0.b32.cont [3/4] (short) %v569_v7, 128 }
 0x2be   :  { %v547_v13 = vpop.f32.mrf.mxu1 }
 0x2bf   :  { %v571_v14 = vmax.f32 %v563_v12, 0.0  ;;  %v564_v15 = vadd.f32 %v547_v13, %v332_v10  ;;  %611 = vxpose.xlu1.b32.cont [3/4] (short) %v570_v11, 128 }
 0x2c1   :  { %v572_v16 = vmax.f32 %v564_v15, 0.0  ;;  %580 = vxpose.xlu0.b32.end [4/4] (short) %v571_v14, 128 }
 0x2c3   :  { %612 = vxpose.xlu1.b32.end [4/4] (short) %v572_v16, 128 }
 0x31a   :  { %552 = vperm.xlu0 %1270, %v62_v17  }
 0x331   :  { %v593_v18 = vpop.trf.xlu0 }
 0x332   :  { %1214 = vmatprep.mubr.msk.f32.mxu1 %vm352_vm1, %v593_v18 }
 0x333   :  { %v625_v19 = vpop.trf.xlu1 }
 0x335   :  { %v594_v20 = vpop.trf.xlu0 }
 0x336   :  { %1215 = vmatmul.mubr.msk.f32.vlgmr.msra.gmra.mxu1 %vm352_vm1, %v594_v20 }
 0x337   :  { %v626_v21 = vpop.trf.xlu1 }
 0x339   :  { %v595_v22 = vpop.trf.xlu0 }
 0x33a   :  { %1217 = vmatprep.mubr.msk.f32.mxu1 %vm352_vm1, %v595_v22 }
 0x33b   :  { %v627_v24 = vpop.trf.xlu1 }
 0x33d   :  { %v596_v23 = vpop.trf.xlu0 }
 0x33e   :  { %1218 = vmatmul.mubr.msk.f32.gmra.mxu1 %vm352_vm1, %v596_v23 }
 0x33f   :  { %v628_v26 = vpop.trf.xlu1 }
 0x341   :  { %v597_v25 = vpop.trf.xlu0 }
 0x342   :  { %1220 = vmatprep.mubr.msk.f32.mxu1 %vm352_vm1, %v597_v25 }
 0x343   :  { %v629_v29 = vpop.trf.xlu1 }
 0x345   :  { %v598_v27 = vpop.trf.xlu0 }
 0x346   :  { %1221 = vmatmul.mubr.msk.f32.gmra.mxu1 %vm352_vm1, %v598_v27 }
 0x347   :  { %v630_v31 = vpop.trf.xlu1 }
 0x349   :  { %v599_v28 = vpop.trf.xlu0 }
 0x34a   :  { %1223 = vmatprep.mubr.msk.f32.mxu1 %vm352_vm1, %v599_v28 }
 0x34b   :  { %v631_v34 = vpop.trf.xlu1 }
 0x34d   :  { %v600_v30 = vpop.trf.xlu0 }
 0x34e   :  { %1224 = vmatmul.mubr.msk.f32.gmra.mxu1 %vm352_vm1, %v600_v30 }
 0x34f   :  { %v632_v38 = vpop.trf.xlu1 }
 0x351   :  { %v601_v32 = vpop.trf.xlu0 }
 0x352   :  { %1226 = vmatprep.mubr.msk.f32.mxu1 %vm352_vm1, %v601_v32 }
 0x353   :  { %v633_v41 = vpop.trf.xlu1 }
 0x355   :  { %v602_v33 = vpop.trf.xlu0 }
 0x356   :  { %1227 = vmatmul.mubr.msk.f32.gmra.mxu1 %vm352_vm1, %v602_v33 }
 0x357   :  { %v634_v43 = vpop.trf.xlu1 }
 0x359   :  { %v603_v35 = vpop.trf.xlu0 }
 0x35a   :  { %1229 = vmatprep.mubr.msk.f32.mxu1 %vm352_vm1, %v603_v35 }
 0x35b   :  { %v635_v46 = vpop.trf.xlu1 }
 0x35d   :  { %v604_v39 = vpop.trf.xlu0 }
 0x35e   :  { %1230 = vmatmul.mubr.msk.f32.gmra.mxu1 %vm352_vm1, %v604_v39 }
 0x35f   :  { %v636_v47 = vpop.trf.xlu1 }
 0x361   :  { %v605_v40 = vpop.trf.xlu0 }
 0x362   :  { %1232 = vmatprep.mubr.msk.f32.mxu1 %vm352_vm1, %v605_v40 }
 0x363   :  { %v637_v48 = vpop.trf.xlu1 }
 0x365   :  { %v606_v42 = vpop.trf.xlu0 }
 0x366   :  { %1233 = vmatmul.mubr.msk.f32.gmra.mxu1 %vm352_vm1, %v606_v42 }
 0x367   :  { %v638_v49 = vpop.trf.xlu1 }
 0x369   :  { %v607_v44 = vpop.trf.xlu0 }
 0x36a   :  { %1235 = vmatprep.mubr.msk.f32.mxu1 %vm352_vm1, %v607_v44 }
 0x36b   :  { %v639_v50 = vpop.trf.xlu1 }
 0x36d   :  { %v608_v45 = vpop.trf.xlu0 }
 0x36e   :  { %1236 = vmatmul.mubr.msk.f32.gmra.mxu1 %vm352_vm1, %v608_v45 }
 0x36f   :  { %1238 = vmatprep.mubr.msk.f32.mxu1 %vm352_vm1, %v625_v19  ;;  %v640_v51 = vpop.trf.xlu1 }
 0x372   :  { %1239 = vmatmul.mubr.msk.f32.gmra.mxu1 %vm352_vm1, %v626_v21 }
 0x373   :  { %1241 = vmatprep.mubr.msk.f32.mxu1 %vm352_vm1, %v627_v24 }
 0x376   :  { %1242 = vmatmul.mubr.msk.f32.gmra.mxu1 %vm352_vm1, %v628_v26 }
 0x377   :  { %1244 = vmatprep.mubr.msk.f32.mxu1 %vm352_vm1, %v629_v29 }
 0x37a   :  { %1245 = vmatmul.mubr.msk.f32.gmra.mxu1 %vm352_vm1, %v630_v31 }
 0x37b   :  { %1247 = vmatprep.mubr.msk.f32.mxu1 %vm352_vm1, %v631_v34 }
 0x37e   :  { %1248 = vmatmul.mubr.msk.f32.gmra.mxu1 %vm352_vm1, %v632_v38 }
 0x37f   :  { %1250 = vmatprep.mubr.msk.f32.mxu1 %vm352_vm1, %v633_v41 }
 0x382   :  { %1251 = vmatmul.mubr.msk.f32.gmra.mxu1 %vm352_vm1, %v634_v43 }
 0x383   :  { %1253 = vmatprep.mubr.msk.f32.mxu1 %vm352_vm1, %v635_v46 }
 0x386   :  { %1254 = vmatmul.mubr.msk.f32.gmra.mxu1 %vm352_vm1, %v636_v47 }
 0x387   :  { %1256 = vmatprep.mubr.msk.f32.mxu1 %vm352_vm1, %v637_v48 }
 0x38a   :  { %1257 = vmatmul.mubr.msk.f32.gmra.mxu1 %vm352_vm1, %v638_v49 }
 0x38b   :  { %1259 = vmatprep.mubr.msk.f32.mxu1 %vm352_vm1, %v639_v50 }
 0x38e   :  { %1260 = vmatmul.mubr.msk.f32.gmra.mxu1 %vm352_vm1, %v640_v51 }
 0x395   :  { %v553_v52 = vpop.permute.xlu0 %552 }
 0x396   :  { %v555_v53 = vadd.f32 %v553_v52, %v1516_v36  ;;  %v1570_v36 = vld [vmem:[%s1736_s1 + $0xa8] ss:$0 sm:$0xff] }
 0x398   :  { %v1120_v54 = vmul.f32 -1.442695, %v555_v53 }
 0x39a   :  { %1271 = vpow2.f32 %v1120_v54 }
 0x39b   :  { %1273 = vtanh.f32 %v555_v53 }
 0x3a7   :  { %v1272_v55 = vpop.eup %1271 }
 0x3a8   :  { %v1000_v56 = vadd.f32 1.0, %v1272_v55  ;;  %v1274_v60 = vpop.eup %1273 }
 0x3aa   :  { %1275 = vrcp.f32 %v1000_v56 }
 0x3b7   :  { %v1276_v61 = vpop.eup %1275 }
 0x3b8   :  { %v1011_v62 = vsel %vm1010_vm2, %v1274_v60, %v1276_v61 }
 0x3b9   :  { %v1022_v63 = vsel %vm1020_vm3, %v1011_v62, 0.0 }
 0x3ba   :  { %v1025_v0 = vsel %vm1024_vm4, %v1022_v63, 0.0 }
 0x3bb   :  { %1028 = vadd.xlane.f32.xlu1 %v1025_v0 }
 0x3f6   :  { %v1216_v1 = vpop.f32.mrf.mxu1 }
 0x3f7   :  { %v809_v2 = vadd.f32 %v1216_v1, %v1570_v36 }
 0x3f8   :  { %v803_v3 = vpop.f32.mrf.mxu1 }
 0x3f9   :  { %963 = vst.msk [vmem:[%s1738_s2 + $0x8] sm:$0xff] %vm108_vm0, %v809_v2  ;;  %v804_v4 = vadd.f32 %v1570_v36, %v803_v3 }
 0x3fb   :  { %962 = vst.msk [vmem:[%s1738_s2] sm:$0xff] %vm108_vm0, %v804_v4 }
 0x3fe   :  { %v1219_v37 = vpop.f32.mrf.mxu1 }
 0x3ff   :  { %v819_v5 = vadd.f32 %v1219_v37, %v1570_v36 }
 0x400   :  { %v813_v6 = vpop.f32.mrf.mxu1 }
 0x401   :  { %965 = vst.msk [vmem:[%s1738_s2 + $0x18] sm:$0xff] %vm108_vm0, %v819_v5  ;;  %v814_v7 = vadd.f32 %v1570_v36, %v813_v6 }
 0x403   :  { %964 = vst.msk [vmem:[%s1738_s2 + $0x10] sm:$0xff] %vm108_vm0, %v814_v7 }
 0x406   :  { %v1222_v8 = vpop.f32.mrf.mxu1 }
 0x407   :  { %v829_v9 = vadd.f32 %v1222_v8, %v1570_v36 }
 0x408   :  { %v823_v10 = vpop.f32.mrf.mxu1 }
 0x409   :  { %967 = vst.msk [vmem:[%s1738_s2 + $0x28] sm:$0xff] %vm108_vm0, %v829_v9  ;;  %v824_v11 = vadd.f32 %v1570_v36, %v823_v10 }
 0x40b   :  { %966 = vst.msk [vmem:[%s1738_s2 + $0x20] sm:$0xff] %vm108_vm0, %v824_v11 }
 0x40e   :  { %v1225_v12 = vpop.f32.mrf.mxu1 }
 0x40f   :  { %v839_v13 = vadd.f32 %v1225_v12, %v1570_v36 }
 0x410   :  { %v833_v14 = vpop.f32.mrf.mxu1 }
 0x411   :  { %969 = vst.msk [vmem:[%s1738_s2 + $0x38] sm:$0xff] %vm108_vm0, %v839_v13  ;;  %v834_v15 = vadd.f32 %v1570_v36, %v833_v14 }
 0x413   :  { %968 = vst.msk [vmem:[%s1738_s2 + $0x30] sm:$0xff] %vm108_vm0, %v834_v15 }
 0x416   :  { %v1228_v16 = vpop.f32.mrf.mxu1 }
 0x417   :  { %v849_v17 = vadd.f32 %v1228_v16, %v1570_v36 }
 0x418   :  { %v843_v18 = vpop.f32.mrf.mxu1 }
 0x419   :  { %971 = vst.msk [vmem:[%s1738_s2 + $0x48] sm:$0xff] %vm108_vm0, %v849_v17  ;;  %v844_v19 = vadd.f32 %v1570_v36, %v843_v18 }
 0x41b   :  { %970 = vst.msk [vmem:[%s1738_s2 + $0x40] sm:$0xff] %vm108_vm0, %v844_v19 }
 0x41e   :  { %v1231_v20 = vpop.f32.mrf.mxu1 }
 0x41f   :  { %v859_v21 = vadd.f32 %v1231_v20, %v1570_v36 }
 0x420   :  { %v853_v22 = vpop.f32.mrf.mxu1 }
 0x421   :  { %973 = vst.msk [vmem:[%s1738_s2 + $0x58] sm:$0xff] %vm108_vm0, %v859_v21  ;;  %v854_v23 = vadd.f32 %v1570_v36, %v853_v22 }
 0x423   :  { %972 = vst.msk [vmem:[%s1738_s2 + $0x50] sm:$0xff] %vm108_vm0, %v854_v23 }
 0x426   :  { %v1234_v24 = vpop.f32.mrf.mxu1 }
 0x427   :  { %v869_v25 = vadd.f32 %v1234_v24, %v1570_v36 }
 0x428   :  { %v863_v26 = vpop.f32.mrf.mxu1 }
 0x429   :  { %975 = vst.msk [vmem:[%s1738_s2 + $0x68] sm:$0xff] %vm108_vm0, %v869_v25  ;;  %v864_v27 = vadd.f32 %v1570_v36, %v863_v26 }
 0x42b   :  { %974 = vst.msk [vmem:[%s1738_s2 + $0x60] sm:$0xff] %vm108_vm0, %v864_v27 }
 0x42e   :  { %v1237_v28 = vpop.f32.mrf.mxu1 }
 0x42f   :  { %v879_v29 = vadd.f32 %v1237_v28, %v1570_v36 }
 0x430   :  { %v873_v30 = vpop.f32.mrf.mxu1 }
 0x431   :  { %977 = vst.msk [vmem:[%s1738_s2 + $0x78] sm:$0xff] %vm108_vm0, %v879_v29  ;;  %v874_v31 = vadd.f32 %v1570_v36, %v873_v30 }
 0x432   :  { %v1240_v32 = vpop.f32.mrf.mxu1 }
 0x433   :  { %976 = vst.msk [vmem:[%s1738_s2 + $0x70] sm:$0xff] %vm108_vm0, %v874_v31  ;;  %v889_v33 = vadd.f32 %v1240_v32, %v1570_v36 }
 0x434   :  { %v883_v34 = vpop.f32.mrf.mxu1 }
 0x435   :  { %979 = vst.msk [vmem:[%s1738_s2 + $0x88] sm:$0xff] %vm108_vm0, %v889_v33  ;;  %v884_v35 = vadd.f32 %v1570_v36, %v883_v34 }
 0x436   :  { %v1243_v38 = vpop.f32.mrf.mxu1 }
 0x437   :  { %978 = vst.msk [vmem:[%s1738_s2 + $0x80] sm:$0xff] %vm108_vm0, %v884_v35  ;;  %v899_v39 = vadd.f32 %v1243_v38, %v1570_v36 }
 0x438   :  { %v893_v40 = vpop.f32.mrf.mxu1 }
 0x439   :  { %981 = vst.msk [vmem:[%s1738_s2 + $0x98] sm:$0xff] %vm108_vm0, %v899_v39  ;;  %v894_v41 = vadd.f32 %v1570_v36, %v893_v40 }
 0x43a   :  { %v1246_v42 = vpop.f32.mrf.mxu1 }
 0x43b   :  { %980 = vst.msk [vmem:[%s1738_s2 + $0x90] sm:$0xff] %vm108_vm0, %v894_v41  ;;  %v909_v43 = vadd.f32 %v1246_v42, %v1570_v36 }
 0x43c   :  { %v903_v44 = vpop.f32.mrf.mxu1 }
 0x43d   :  { %983 = vst.msk [vmem:[%s1738_s2 + $0xa8] sm:$0xff] %vm108_vm0, %v909_v43  ;;  %v904_v45 = vadd.f32 %v1570_v36, %v903_v44 }
 0x43e   :  { %v1249_v46 = vpop.f32.mrf.mxu1 }
 0x43f   :  { %982 = vst.msk [vmem:[%s1738_s2 + $0xa0] sm:$0xff] %vm108_vm0, %v904_v45  ;;  %v919_v47 = vadd.f32 %v1249_v46, %v1570_v36 }
 0x440   :  { %v913_v48 = vpop.f32.mrf.mxu1 }
 0x441   :  { %985 = vst.msk [vmem:[%s1738_s2 + $0xb8] sm:$0xff] %vm108_vm0, %v919_v47  ;;  %v914_v49 = vadd.f32 %v1570_v36, %v913_v48 }
 0x442   :  { %v1252_v50 = vpop.f32.mrf.mxu1 }
 0x443   :  { %984 = vst.msk [vmem:[%s1738_s2 + $0xb0] sm:$0xff] %vm108_vm0, %v914_v49  ;;  %v929_v51 = vadd.f32 %v1252_v50, %v1570_v36 }
 0x444   :  { %v923_v52 = vpop.f32.mrf.mxu1  ;;  %v1029_v53 = vpop.xlane.xlu1 %1028 }
 0x445   :  { %987 = vst.msk [vmem:[%s1738_s2 + $0xc8] sm:$0xff] %vm108_vm0, %v929_v51  ;;  %v924_v54 = vadd.f32 %v1570_v36, %v923_v52  ;;  %1030 = vst [vmem:[%s1737_s3] sm:$0xf] %v1029_v53 }
 0x446   :  { %v1255_v55 = vpop.f32.mrf.mxu1 }
 0x447   :  { %986 = vst.msk [vmem:[%s1738_s2 + $0xc0] sm:$0xff] %vm108_vm0, %v924_v54  ;;  %v939_v56 = vadd.f32 %v1255_v55, %v1570_v36 }
 0x448   :  { %v933_v57 = vpop.f32.mrf.mxu1 }
 0x449   :  { %989 = vst.msk [vmem:[%s1738_s2 + $0xd8] sm:$0xff] %vm108_vm0, %v939_v56  ;;  %v934_v58 = vadd.f32 %v1570_v36, %v933_v57 }
 0x44a   :  { %v1258_v59 = vpop.f32.mrf.mxu1 }
 0x44b   :  { %988 = vst.msk [vmem:[%s1738_s2 + $0xd0] sm:$0xff] %vm108_vm0, %v934_v58  ;;  %v949_v60 = vadd.f32 %v1258_v59, %v1570_v36 }
 0x44c   :  { %v943_v61 = vpop.f32.mrf.mxu1 }
 0x44d   :  { %991 = vst.msk [vmem:[%s1738_s2 + $0xe8] sm:$0xff] %vm108_vm0, %v949_v60  ;;  %v944_v62 = vadd.f32 %v1570_v36, %v943_v61 }
 0x44e   :  { %v1261_v63 = vpop.f32.mrf.mxu1 }
 0x44f   :  { %990 = vst.msk [vmem:[%s1738_s2 + $0xe0] sm:$0xff] %vm108_vm0, %v944_v62  ;;  %v959_v0 = vadd.f32 %v1261_v63, %v1570_v36 }
 0x450   :  { %v953_v1 = vpop.f32.mrf.mxu1 }
 0x451   :  { %993 = vst.msk [vmem:[%s1738_s2 + $0xf8] sm:$0xff] %vm108_vm0, %v959_v0  ;;  %v954_v2 = vadd.f32 %v1570_v36, %v953_v1 }
 0x453   :  { %992 = vst.msk [vmem:[%s1738_s2 + $0xf0] sm:$0xff] %vm108_vm0, %v954_v2 }

</bundles_post_ra>
